<compile_context>
chip_gen: v7x
topology: tpu7x:2x2x1
jax: 0.10.0
libtpu: 0.0.40
codegen_flags: <defaults>
</compile_context>

<pallas_src>
import functools

import jax
import jax.numpy as jnp
from jax.experimental import pallas as pl
from jax.experimental.pallas import tpu as pltpu

LANES = 128
SUBLANES = 8          # f32 sublane granularity
_NEG_BIG = -1e30      # padded-class bias: exp(_NEG_BIG - m) underflows to exactly 0


def _round_up(x, m):
    return ((x + m - 1) // m) * m


def _pick_tk(f_pad, tk_target):
    """Largest 128-multiple divisor of f_pad that is <= tk_target (at least 128)."""
    q = f_pad // LANES
    best = 1
    for d in range(1, q + 1):
        if q % d == 0 and d * LANES <= tk_target:
            best = d
    return best * LANES


def prepare_params(weight, bias, *, n_pad_to=LANES):
    """One-time parameter prep (hoisted out of the per-call path).

    weight: (num_classes, F) torch nn.Linear layout; bias: (num_classes,).
    Returns (w_t, b): w_t (F_pad, N_pad) bf16 pre-transposed + zero-padded weight,
                      b   (1, N_pad)    f32 bias, padded classes set to -1e30.
    """
    N, F = weight.shape
    F_pad = _round_up(F, LANES)
    N_pad = _round_up(N, n_pad_to)
    w_t = jnp.zeros((F_pad, N_pad), jnp.bfloat16)
    w_t = w_t.at[:F, :N].set(jnp.asarray(weight, jnp.float32).T.astype(jnp.bfloat16))
    b = jnp.full((1, N_pad), _NEG_BIG, jnp.float32)
    b = b.at[0, :N].set(jnp.asarray(bias, jnp.float32))
    return w_t, b


def _linear_softmax_kernel(x_ref, w_ref, b_ref, o_ref, acc_ref, *, tk):
    # x_ref: (TB, TK) f32 streamed tile | w_ref: (F_pad, N_pad) bf16, VMEM-resident (fetched once)
    # b_ref: (1, N_pad) f32             | o_ref: (TB, N_pad) f32 | acc_ref: (TB, N_pad) f32 scratch
    k = pl.program_id(1)

    @pl.when(k == 0)
    def _():
        # Initialize accumulator with the broadcast bias: saves the epilogue add.
        acc_ref[...] = jnp.broadcast_to(b_ref[...], acc_ref.shape)

    koff = pl.multiple_of(k * tk, tk)
    w_blk = w_ref[pl.ds(koff, tk), :]                      # slice the resident weight slab
    acc_ref[...] += jnp.dot(x_ref[...].astype(jnp.bfloat16), w_blk,
                            preferred_element_type=jnp.float32)

    @pl.when(k == pl.num_programs(1) - 1)
    def _():
        logits = acc_ref[...]                              # padded classes sit at -1e30
        m = jnp.max(logits, axis=1, keepdims=True)         # numerically stable softmax
        e = jnp.exp(logits - m)                            # padded cols -> exactly 0
        s = jnp.sum(e, axis=1, keepdims=True)
        o_ref[...] = (e / s).astype(o_ref.dtype)           # exact normalization (off crit path)


def res_classificator_forward(x_nchw, w_t, b, num_classes,
                              *, tb_target=256, tk_target=4096):
    """x_nchw: (B, C, H, W); w_t/b: outputs of prepare_params()."""
    B = x_nchw.shape[0]
    x_flat = x_nchw.reshape(B, -1)                 # Flatten.forward (row-major == torch .view)
    F = x_flat.shape[1]
    F_pad, N_pad = w_t.shape
    assert F_pad == _round_up(F, LANES), "w_t was prepared for a different feature count"
    assert num_classes <= N_pad

    TK = _pick_tk(F_pad, tk_target)

    # Batch tiling: TB multiple of 8 (f32 sublanes); guarantee >=2 batch tiles when the batch
    # allows so the "parallel" axis can shard across both v7x TensorCores.
    B_pad = _round_up(max(B, SUBLANES), SUBLANES)
    TB = min(tb_target, B_pad)
    if B_pad // TB < 2 and B_pad >= 2 * SUBLANES:
        TB = _round_up((B_pad + 1) // 2, SUBLANES)
    B_pad = _round_up(B_pad, TB)

    # Pad only when strictly needed. For the real model (channels=1024 -> F = 392*128) and
    # TB-divisible batches this is a no-op: x is streamed from HBM untouched, read-once, f32.
    if (B_pad, F_pad) != (B, F):
        x_in = jnp.pad(x_flat, ((0, B_pad - B), (0, F_pad - F)))
    else:
        x_in = x_flat

    grid = (B_pad // TB, F_pad // TK)

    # VMEM footprint: double-buffered f32 x tiles + resident bf16 weight (2 buffers, worst
    # case) + double-buffered output + f32 accumulator + bias.
    vmem_est = (2 * TB * TK * 4 + 2 * F_pad * N_pad * 2
                + 2 * TB * N_pad * 4 + TB * N_pad * 4 + 2 * N_pad * 4)
    vmem_limit = int(min(max(vmem_est * 5 // 4, 32 * 1024 * 1024), 64 * 1024 * 1024))

    out = pl.pallas_call(
        functools.partial(_linear_softmax_kernel, tk=TK),
        out_shape=jax.ShapeDtypeStruct((B_pad, N_pad), jnp.float32),
        grid_spec=pltpu.PrefetchScalarGridSpec(
            num_scalar_prefetch=0,
            grid=grid,
            in_specs=[
                pl.BlockSpec((TB, TK), lambda i, k: (i, k)),        # x: streamed f32 tiles
                pl.BlockSpec((F_pad, N_pad), lambda i, k: (0, 0)),  # weight: fetched once, resident
                pl.BlockSpec((1, N_pad), lambda i, k: (0, 0)),      # bias: VMEM-resident
            ],
            out_specs=pl.BlockSpec((TB, N_pad), lambda i, k: (i, 0)),
            scratch_shapes=[pltpu.VMEM((TB, N_pad), jnp.float32)],
        ),
        compiler_params=pltpu.CompilerParams(
            dimension_semantics=("parallel", "arbitrary"),
            vmem_limit_bytes=vmem_limit),
        cost_estimate=pl.CostEstimate(
            flops=2 * B_pad * F_pad * N_pad,
            transcendentals=B_pad * N_pad,
            bytes_accessed=B_pad * F_pad * 4 + F_pad * N_pad * 2 + B_pad * N_pad * 4),
    )(x_in, w_t, b)

    return out[:B, :num_classes]


if __name__ == "__main__":
    # Small shapes consistent with the module: linear1 expects channels * 7 * 7 features.
    # Scaled-down channels=16 (instead of 1024) for the synthetic run.
    B = 2
    channels = 16
    H = W = 7
    num_classes = 10
    F = channels * H * W  # 784

    key = jax.random.PRNGKey(0)
    kx, kw, kb = jax.random.split(key, 3)

    x = jax.random.normal(kx, (B, channels, H, W), dtype=jnp.float32)
    # Deterministic "nn.Linear"-style init (uniform in [-1/sqrt(F), 1/sqrt(F)])
    bound = 1.0 / (F ** 0.5)
    weight = jax.random.uniform(kw, (num_classes, F), minval=-bound, maxval=bound,
                                dtype=jnp.float32)
    bias = jax.random.uniform(kb, (num_classes,), minval=-bound, maxval=bound,
                              dtype=jnp.float32)

    # One-time parameter prep (transpose + pad + bf16 cast), hoisted out of the forward.
    w_t, b_pad = prepare_params(weight, bias)

    # tk_target=256 so the tiny test still exercises the K-accumulation loop (7 steps of 128).
    out = res_classificator_forward(x, w_t, b_pad, num_classes, tk_target=256)
    out = jax.block_until_ready(out)

    # Reference with the same bf16 input/weight rounding the kernel uses (f32 accumulation).
    x_bf = x.reshape(B, -1).astype(jnp.bfloat16).astype(jnp.float32)
    w_bf = weight.astype(jnp.bfloat16).astype(jnp.float32)
    ref = jax.nn.softmax(x_bf @ w_bf.T + bias, axis=1)

    assert out.shape == (B, num_classes)
    assert jnp.allclose(out, ref, atol=2e-3, rtol=2e-3), jnp.max(jnp.abs(out - ref))
    assert jnp.allclose(jnp.sum(out, axis=1), 1.0, atol=1e-4)

    print("KERNEL_OK")
</pallas_src>

<mosaic_0001>
module attributes {stable_mosaic.version = 11 : i64} {
  func.func @_linear_softmax_kernel(%arg0: i32, %arg1: i32, %arg2: memref<8x128xf32, #tpu.memory_space<vmem>>, %arg3: memref<896x128xbf16, #tpu.memory_space<vmem>>, %arg4: memref<1x128xf32, #tpu.memory_space<vmem>>, %arg5: memref<8x128xf32, #tpu.memory_space<vmem>>, %arg6: memref<8x128xf32, #tpu.memory_space<vmem>>) attributes {dimension_semantics = [#tpu.dimension_semantics<parallel>, #tpu.dimension_semantics<arbitrary>], iteration_bounds = array<i64: 1, 7>, scalar_prefetch = 0 : i64, scratch_operands = 1 : i64, tpu.core_type = #tpu.core_type<tc>, window_params = [{transform_indices = @transform_0, window_bounds = array<i64: 8, 128>}, {pipeline_mode = #tpu.pipeline_mode<synchronous>, transform_indices = @transform_1, window_bounds = array<i64: 896, 128>}, {pipeline_mode = #tpu.pipeline_mode<synchronous>, transform_indices = @transform_2, window_bounds = array<i64: 1, 128>}, {transform_indices = @transform_3, window_bounds = array<i64: 8, 128>}]} {
    %c0_i32 = arith.constant 0 : i32
    %0 = arith.cmpi eq, %arg1, %c0_i32 : i32
    %1 = arith.extui %0 : i1 to i32
    %c0_i32_0 = arith.constant 0 : i32
    %2 = arith.cmpi ne, %1, %c0_i32_0 : i32
    scf.if %2 {
      %c0_8 = arith.constant 0 : index
      %c0_9 = arith.constant 0 : index
      %16 = vector.load %arg4[%c0_8, %c0_9] : memref<1x128xf32, #tpu.memory_space<vmem>>, vector<1x128xf32>
      %17 = vector.shape_cast %16 : vector<1x128xf32> to vector<1x128xf32>
      %18 = vector.broadcast %17 : vector<1x128xf32> to vector<8x128xf32>
      %c0_10 = arith.constant 0 : index
      %c0_11 = arith.constant 0 : index
      %19 = vector.load %arg6[%c0_10, %c0_11] : memref<8x128xf32, #tpu.memory_space<vmem>>, vector<8x128xf32>
      tpu.vector_store %arg6[%c0_10, %c0_11], %18 {strides = array<i32>} : memref<8x128xf32, #tpu.memory_space<vmem>>, vector<8x128xf32>,
    } else {
    }
    %c128_i32 = arith.constant 128 : i32
    %3 = arith.muli %arg1, %c128_i32 : i32
    %4 = tpu.assume_multiple %3, 128 : i32
    %5 = arith.index_cast %4 : i32 to index
    %c0 = arith.constant 0 : index
    %6 = vector.load %arg3[%5, %c0] : memref<896x128xbf16, #tpu.memory_space<vmem>>, vector<128x128xbf16>
    %c0_1 = arith.constant 0 : index
    %c0_2 = arith.constant 0 : index
    %7 = vector.load %arg6[%c0_1, %c0_2] : memref<8x128xf32, #tpu.memory_space<vmem>>, vector<8x128xf32>
    %c0_3 = arith.constant 0 : index
    %c0_4 = arith.constant 0 : index
    %8 = vector.load %arg2[%c0_3, %c0_4] : memref<8x128xf32, #tpu.memory_space<vmem>>, vector<8x128xf32>
    %9 = arith.truncf %8 : vector<8x128xf32> to vector<8x128xbf16>
    %cst = arith.constant dense<0.000000e+00> : vector<8x128xf32>
    %10 = tpu.matmul %9, %6, %cst {dimension_numbers = #tpu.dot_dimension_numbers<[1], [0], [0], [1], [0, 0, 1, 1], [], []>} : vector<8x128xbf16>, vector<128x128xbf16>, vector<8x128xf32> -> vector<8x128xf32>
    %11 = arith.addf %7, %10 : vector<8x128xf32>
    %c0_5 = arith.constant 0 : index
    %c0_6 = arith.constant 0 : index
    %12 = vector.load %arg6[%c0_5, %c0_6] : memref<8x128xf32, #tpu.memory_space<vmem>>, vector<8x128xf32>
    tpu.vector_store %arg6[%c0_5, %c0_6], %11 {strides = array<i32>} : memref<8x128xf32, #tpu.memory_space<vmem>>, vector<8x128xf32>,
    %c6_i32 = arith.constant 6 : i32
    %13 = arith.cmpi eq, %arg1, %c6_i32 : i32
    %14 = arith.extui %13 : i1 to i32
    %c0_i32_7 = arith.constant 0 : i32
    %15 = arith.cmpi ne, %14, %c0_i32_7 : i32
    scf.if %15 {
      %c0_8 = arith.constant 0 : index
      %c0_9 = arith.constant 0 : index
      %16 = vector.load %arg6[%c0_8, %c0_9] : memref<8x128xf32, #tpu.memory_space<vmem>>, vector<8x128xf32>
      %cst_10 = arith.constant dense<0xFF800000> : vector<8xf32>
      %17 = vector.multi_reduction <maximumf>, %16, %cst_10 [1] : vector<8x128xf32> to vector<8xf32>
      %18 = vector.shape_cast %17 : vector<8xf32> to vector<8x1xf32>
      %19 = vector.broadcast %18 : vector<8x1xf32> to vector<8x128xf32>
      %20 = arith.subf %16, %19 : vector<8x128xf32>
      %21 = math.exp %20 : vector<8x128xf32>
      %cst_11 = arith.constant dense<0.000000e+00> : vector<8xf32>
      %22 = vector.multi_reduction <add>, %21, %cst_11 [1] : vector<8x128xf32> to vector<8xf32>
      %23 = vector.shape_cast %22 : vector<8xf32> to vector<8x1xf32>
      %24 = vector.broadcast %23 : vector<8x1xf32> to vector<8x128xf32>
      %25 = arith.divf %21, %24 : vector<8x128xf32>
      %c0_12 = arith.constant 0 : index
      %c0_13 = arith.constant 0 : index
      %26 = vector.load %arg5[%c0_12, %c0_13] : memref<8x128xf32, #tpu.memory_space<vmem>>, vector<8x128xf32>
      tpu.vector_store %arg5[%c0_12, %c0_13], %25 {strides = array<i32>} : memref<8x128xf32, #tpu.memory_space<vmem>>, vector<8x128xf32>,
    } else {
    }
    return
  }
  func.func @transform_0(%arg0: i32, %arg1: i32) -> (i32, i32) {
    %c0_i32 = arith.constant 0 : i32
    return %arg0, %arg1 : i32, i32
  }
  func.func @transform_1(%arg0: i32, %arg1: i32) -> (i32, i32) {
    %c0_i32 = arith.constant 0 : i32
    %c0_i32_0 = arith.constant 0 : i32
    %c0_i32_1 = arith.constant 0 : i32
    return %c0_i32, %c0_i32_0 : i32, i32
  }
  func.func @transform_2(%arg0: i32, %arg1: i32) -> (i32, i32) {
    %c0_i32 = arith.constant 0 : i32
    %c0_i32_0 = arith.constant 0 : i32
    %c0_i32_1 = arith.constant 0 : i32
    return %c0_i32, %c0_i32_0 : i32, i32
  }
  func.func @transform_3(%arg0: i32, %arg1: i32) -> (i32, i32) {
    %c0_i32 = arith.constant 0 : i32
    %c0_i32_0 = arith.constant 0 : i32
    return %arg0, %c0_i32 : i32, i32
  }
}

</mosaic_0001>

<bundles_post_ra>
// kernel: tpu_custom_call.1
= control target key start
LH: loop header
LB: loop body
LE: loop exit
PB: predicated region body
PF: predicated region fallthrough
CT: control target
= control target key end

     0   :  { %8 = vsyncpa [#allocation4], 0  ;;  %s942_s0 = inlined_call_operand.hbm [shape: f32[8,896], index: 0, kind: input, shape index: {}]   ;;  %s943_s1 = inlined_call_operand.hbm [shape: bf16[896,128], index: 1, kind: input, shape index: {}]   ;;  %s944_s2 = inlined_call_operand.vmem [shape: f32[1,128], index: 2, kind: input, shape index: {}]   ;;  %s945_s3 = inlined_call_operand.hbm [shape: f32[8,128], index: 3, kind: output, shape index: {}]  }
   0x1   :  { %10 = vsyncpa [#allocation4 + $0x1], 0 }
   0x2   :  { %11 = vsyncpa [#allocation7], 0 }
   0x3   :  { %12 = vsyncpa [#allocation5], 0  ;;  %s751_s12 = smov 0   ;;  %s753_s13 = smov 0  }
   0x4   :  { %s755_s14 = smov 0   ;;  %s757_s15 = smov 0  }
   0x5   :  { %s759_s16 = smov 0   ;;  %s761_s17 = smov 0  }
   0x6 LB: > { %s436_s18 = sadd.s32 4294967295, %s722_s17   ;;  %p52_p0 = scmp.ne.s32.totalorder %s706_s13, %s702_s12  ;;  %s722_s17 = sphi %s761_s17, %s18_s17   ;;  %s718_s16 = sphi %s759_s16, %s963_s16   ;;  %s714_s15 = sphi %s757_s15, %s962_s15   ;;  %s710_s14 = sphi %s755_s14, %s961_s14   ;;  %s706_s13 = sphi %s753_s13, %s960_s13   ;;  %s702_s12 = sphi %s751_s12, %s959_s12  }
   0x7   : > { %p783_p1 = scmp.eq.s32.totalorder %s436_s18, 0  ;;  %p437_p2 = scmp.ge.s32.totalorder %s722_s17, 1 }
   0x8   : > { %p131_p3 = scmp.lt.s32.totalorder %s722_s17, 8  ;;  %s724_s22 = smov [#allocation6]  }
   0x9   : > { %s950_s19 = scalar_select %p783_p1, 1, 0 }
   0xa   : > { %p791_p4 = por %p783_p1, %p52_p0  ;;  %p795_p5 = pnand %p437_p2, %p131_p3 }
   0xb   : > { %s143_s23 = sshll.u32 %s724_s22, 4  ;;  %s27_s25 = sadd.s32 1, %s718_s16  ;;  %s144_s23 = int_to_ptr.vmem [resolvable:$true] %s143_s23 }
   0xc   : > { %s951_s20 = scalar_select %p791_p4, 1, 0 }
   0xd   : > { %s952_s21 = scalar_select %p795_p5, 1, 0 }
   0xe   : > { %p501_p6 = pneg %p795_p5  ;;  %s580_s28 = scalar_lea.hbm %s943_s1, 7168 }
   0xf   : > { %p581_p8 = scmp.ne.s32.totalorder %s943_s1, %s580_s28  ;;  %p587_p12 = scmp.lt.u32.totalorder %s580_s28, %s943_s1 }
  0x10   : > { %p803_p7 = pnand %p501_p6, %p783_p1 }
  0x12   : > { %p582_p9 = pneg %p803_p7 }
  0x14   : > { %p583_p10 = pnand %p582_p9, %p581_p8 }
  0x16   : > { %p584_p11 = pneg %p583_p10 }
  0x18   : > { %p589_p13 = pnand %p587_p12, %p584_p11 }
  0x1a   : > { %592 = shalt.err (!%p589_p13)
}
  0x1b   : > { %s593_s6 = scalar_lea.vmem %s144_s23, 7168  ;;  %p601_p6 = scmp.lt.s32.totalorder %s144_s23, %s144_s23 }
  0x1c   : > { %p594_p0 = scmp.ne.s32.totalorder %s144_s23, %s593_s6  ;;  %p602_p1 = scmp.lt.s32.totalorder %s593_s6, %s593_s6 }
  0x1e   : > { %p596_p2 = pnand %p594_p0, %p582_p9  ;;  %p603_p4 = por %p602_p1, %p601_p6 }
  0x20   : > { %p597_p3 = pneg %p596_p2 }
  0x22   : > { %p604_p5 = pnand %p603_p4, %p597_p3 }
  0x24   : > { %607 = shalt.err (!%p604_p5)
}
  0x25   : > { %s725_s7 = smov 64   ;;  %s726_s8 = smov 4  }
  0x26   : > { %504 = dma.hbm_to_vmem [thread:$0]  (!%p803_p7), %s943_s1, 7168, %s144_s23, [#allocation7], %s725_s7, %s725_s7, %s726_s8  }
  0x27   : > { %p28_p1 = scmp.ge.s32.totalorder %s27_s25, 7  ;;  %s39_s11 = sadd.s32 1, %s710_s14 }
  0x28   : > { %p46_p4 = scmp.ne.s32.totalorder %s710_s14, %s706_s13  ;;  %p47_p5 = scmp.eq.s32.totalorder %s722_s17, 0 }
  0x29   : > { %s965_s25 = smov (%p28_p1, %s27_s25), 0  ;;  %p510_p9 = scmp.lt.s32.totalorder %s722_s17, 7 }
  0x2a   : > { %p48_p8 = por %p47_p5, %p46_p4  ;;  %s35_s12 = ssub.s32 %s718_s16, %s965_s25 }
  0x2b   : > { %s160_s22 = sand.u32 1, %s710_s14   ;;  %p37_p10 = scmp.eq.s32.totalorder %s35_s12, 0 }
  0x2c   : > { %s440_s26 = sshll.u32 %s160_s22, 3  ;;  %s441_s27 = sshll.u32 %s718_s16, 7 }
  0x2d   : > { %s836_s28 = scalar_select %p37_p10, %s710_s14, %s39_s11  }
  0x2e   : > { %s841_s23 = scalar_lea.hbm %s942_s0, %s441_s27  ;;  %s164_s30 = scalar_lea.vmem [#allocation3], %s440_s26 }
  0x2f   : > { %s173_s4 = sshll.u32 %s164_s30, 4  ;;  %p843_p7 = pnand %p510_p9, %p48_p8  ;;  %s847_s4 = int_to_ptr.vmem [resolvable:$true] %s173_s4 }
  0x30   : > { %s161_s6 = scalar_lea.sflag [#allocation4], %s160_s22  ;;  %s608_s7 = scalar_lea.hbm %s841_s23, 128 }
  0x31   : > { %p609_p11 = scmp.ne.s32.totalorder %s841_s23, %s608_s7  ;;  %p610_p12 = pneg %p843_p7 }
  0x32   : > { %s613_s10 = scalar_lea.hbm %s942_s0, 896  ;;  %p614_p2 = scmp.lt.u32.totalorder %s841_s23, %s942_s0 }
  0x33   : > { %p611_p13 = pnand %p610_p12, %p609_p11  ;;  %p615_p3 = scmp.lt.u32.totalorder %s613_s10, %s608_s7 }
  0x34   : > { %p617_p1 = scmp.lt.u32.totalorder %s608_s7, %s841_s23 }
  0x35   : > { %p612_p0 = pneg %p611_p13  ;;  %p616_p6 = por %p615_p3, %p614_p2 }
  0x37   : > { %p618_p4 = por %p617_p1, %p616_p6 }
  0x39   : > { %p619_p5 = pnand %p618_p4, %p612_p0 }
  0x3b   : > { %622 = shalt.err (!%p619_p5)
}
  0x3c   : > { %s623_s22 = scalar_lea.vmem %s847_s4, 128  ;;  %s727_s26 = smov [#allocation3]  }
  0x3d   : > { %p624_p8 = scmp.ne.s32.totalorder %s847_s4, %s623_s22  ;;  %s628_s27 = sshll.u32 %s727_s26, 4  ;;  %s629_s27 = int_to_ptr.vmem [resolvable:$false] %s628_s27 }
  0x3e   : > { %s630_s24 = scalar_lea.vmem %s629_s27, 256  ;;  %p631_p11 = scmp.lt.s32.totalorder %s847_s4, %s629_s27 }
  0x3f   : > { %p626_p9 = pnand %p624_p8, %p610_p12  ;;  %p632_p13 = scmp.lt.s32.totalorder %s630_s24, %s623_s22 }
  0x41   : > { %p627_p10 = pneg %p626_p9  ;;  %p633_p2 = por %p632_p13, %p631_p11 }
  0x43   : > { %p634_p3 = pnand %p633_p2, %p627_p10 }
  0x45   : > { %637 = shalt.err (!%p634_p3)
}
  0x46   : > { %508 = dma.hbm_to_vmem [thread:$0]  (!%p843_p7), %s841_s23, 128, %s847_s4, %s161_s6  }
  0x47   : > { %p955_p0 = scmp.ne.s32.totalorder %s952_s21, 0 }
  0x48   : > { %s184_s29 = sand.u32 (!%p955_p0), 1, %s706_s13   ;;  %p956_p12 = scmp.ne.s32.totalorder (!%p955_p0), %s951_s20, 0 }
  0x49   : > { %182 = sbr.rel (%p955_p0) target bundleno = 689 (0x2b1), region = 32  ;;  %s877_s30 = sshll.u32 (!%p955_p0), %s184_s29, 3 }
  0x4a   : > { %s185_s7 = scalar_lea.sflag (!%p955_p0), [#allocation4], %s184_s29  ;;  %s188_s8 = scalar_lea.vmem (!%p955_p0), [#allocation3], %s877_s30 }
  0x50   : > { %689 = dma.done.wait (%p956_p12), %s185_s7, 128  }
  0x51   : > { %691 = vsyncadd (%p956_p12), %s185_s7, 4294967168  ;;  %p957_p6 = scmp.ne.s32.totalorder %s950_s19, 0 }
  0x53   : > { %693 = dma.done.wait (%p957_p6), [#allocation7], 7168  }
  0x54   : > { %695 = vsyncadd (%p957_p6), [#allocation7], 4294960128  ;;  %p445_p7 = scmp.ne.s32.totalorder %s714_s15, 0 }
  0x55   : > { %v446_v0 = vld [vmem:[%s944_s2] ss:$0 sm:$0xff] (!%p445_p7) }
  0x56   : > { %214 = sbr.rel (%p445_p7) target bundleno = 93 (0x5d), region = 44  ;;  %222 = vst [vmem:[#allocation2] sm:$0xff] (!%p445_p7), %v446_v0 }
  0x5d PF: > { %s447_s4 = sshll.u32 %s714_s15, 7  ;;  %v728_v1 = vmov 0.0   ;;  %vm729_vm0 = vmmov 0   ;;  %v245_v10 = vld [vmem:[%s188_s8] sm:$0xff]  ;;  %v244_v12 = vld [vmem:[#allocation2] sm:$0xff]  ;;  %p457_p1 = scmp.ne.s32.totalorder %s714_s15, 6 }
  0x5e   : > { %471 = vmatprep.subr.bf16.mxu0 %v728_v1  ;;  %s224_s20 = sshra.s32 %s447_s4, 3  ;;  %487 = vmatprep.mubr.msk.bf16.mxu0 %vm729_vm0, %v728_v1  ;;  %v246_v11 = vpack.c.bf16 %v245_v10, %v245_v10 }
  0x5f   : > { %s448_s5 = sshll.u32 %s224_s20, 2 }
  0x60   : > { %s227_s6 = scalar_lea.vmem [#allocation6], %s448_s5 }
  0x61   : > { %v568_v2 = vld [vmem:[%s227_s6] sm:$0xff]   ;;  %v569_v3 = vld [vmem:[%s227_s6 + $0x8] sm:$0xff]   ;;  %v570_v4 = vld [vmem:[%s227_s6 + $0x10] sm:$0xff]  }
  0x62   : > { %472 = vmatpush3.bf16.msra.mxu0 %v568_v2  ;;  %v571_v5 = vld [vmem:[%s227_s6 + $0x18] sm:$0xff]   ;;  %v572_v6 = vld [vmem:[%s227_s6 + $0x20] sm:$0xff]   ;;  %v573_v7 = vld [vmem:[%s227_s6 + $0x28] sm:$0xff]  }
  0x63   : > { %473 = vmatprep.subr.bf16.mxu0 %v728_v1  ;;  %v574_v8 = vld [vmem:[%s227_s6 + $0x30] sm:$0xff]   ;;  %v575_v9 = vld [vmem:[%s227_s6 + $0x38] sm:$0xff]  }
  0x66   : > { %474 = vmatpush3.bf16.msra.mxu0 %v569_v3 }
  0x67   : > { %475 = vmatprep.subr.bf16.mxu0 %v728_v1 }
  0x6a   : > { %476 = vmatpush3.bf16.msra.mxu0 %v570_v4 }
  0x6b   : > { %477 = vmatprep.subr.bf16.mxu0 %v728_v1 }
  0x6e   : > { %478 = vmatpush3.bf16.msra.mxu0 %v571_v5 }
  0x6f   : > { %479 = vmatprep.subr.bf16.mxu0 %v728_v1 }
  0x72   : > { %480 = vmatpush3.bf16.msra.mxu0 %v572_v6 }
  0x73   : > { %481 = vmatprep.subr.bf16.mxu0 %v728_v1 }
  0x76   : > { %482 = vmatpush3.bf16.msra.mxu0 %v573_v7 }
  0x77   : > { %483 = vmatprep.subr.bf16.mxu0 %v728_v1 }
  0x7a   : > { %484 = vmatpush3.bf16.msra.mxu0 %v574_v8 }
  0x7b   : > { %485 = vmatprep.subr.bf16.mxu0 %v728_v1 }
  0x7e   : > { %486 = vmatpush3.bf16.msra.mxu0 %v575_v9 }
  0x81   : > { %488 = vmatmul.mubr.bf16.vlgmr.msra.gmra.mrb[0].mxu0 %v246_v11 }
 0x151   : > { %340 = sbr.rel (%p457_p1) target bundleno = 664 (0x298), region = 48 }
 0x154   : > { %v329_v13 = vpop.f32.mrb[0].mxu0 }
 0x155   : > { %v335_v14 = vadd.f32 %v329_v13, %v244_v12  ;;  %v489_v15 = vpop.f32.mrb[1].mxu0 }
 0x156   : > { %v332_v16 = vpop.f32.mrb[2].mxu0 }
 0x157   : > { %336 = vst [vmem:[#allocation2] sm:$0xff] %v335_v14  ;;  %v490_v17 = vpop.f32.mrb[3].mxu0 }
 0x15e   : > { %v341_v18 = vld [vmem:[#allocation2] sm:$0xff] }
 0x15f   : > { %342 = vmax.xlane.f32.xlu0 %v341_v18 }
 0x1ec   : > { %v343_v19 = vpop.xlane.xlu0 %342 }
 0x1ed   : > { %v344_v20 = vsub.f32 %v341_v18, %v343_v19 }
 0x1ef   : > { %v345_v21 = vmul.f32 1.442695, %v344_v20 }
 0x1f1   : > { %576 = vpow2.f32 %v345_v21 }
 0x1fb   : > { %v577_v22 = vpop.eup %576 }
 0x1fc   : > { %347 = vadd.xlane.f32.xlu0 %v577_v22 }
 0x289   : > { %v348_v23 = vpop.xlane.xlu0 %347 }
 0x28a   : > { %578 = vrcp.f32 %v348_v23 }
 0x294   : > { %v579_v24 = vpop.eup %578 }
 0x295   : > { %v350_v25 = vmul.f32 %v579_v24, %v577_v22 }
 0x297   : > { %351 = vst [vmem:[#allocation8] sm:$0xff] %v350_v25 }
 0x298 PF: > { %p898_p4 = scmp.eq.s32.totalorder %s436_s18, 6  ;;  %s730_s15 = smov [#allocation8]  }
 0x299   : > { %s361_s9 = sshll.u32 %s730_s15, 4  ;;  %s362_s9 = int_to_ptr.vmem [resolvable:$true] %s361_s9 }
 0x29a   : > { %s638_s10 = scalar_lea.vmem %s362_s9, 128  ;;  %p645_p10 = scmp.lt.s32.totalorder %s362_s9, %s362_s9 }
 0x29b   : > { %p639_p5 = scmp.ne.s32.totalorder %s362_s9, %s638_s10  ;;  %p646_p11 = scmp.lt.s32.totalorder %s638_s10, %s638_s10 }
 0x29d   : > { %p640_p8 = pnand %p639_p5, %p898_p4  ;;  %p647_p13 = por %p646_p11, %p645_p10 }
 0x29f   : > { %p641_p9 = pneg %p640_p8 }
 0x2a1   : > { %p648_p2 = pnand %p647_p13, %p641_p9 }
 0x2a3   : > { %651 = shalt.err (!%p648_p2)
}
 0x2a4   : > { %s652_s18 = scalar_lea.hbm %s945_s3, 128 }
 0x2a5   : > { %p653_p3 = scmp.ne.s32.totalorder %s945_s3, %s652_s18  ;;  %p658_p6 = scmp.lt.u32.totalorder %s652_s18, %s945_s3 }
 0x2a7   : > { %p654_p0 = pnand %p653_p3, %p898_p4 }
 0x2a9   : > { %p655_p12 = pneg %p654_p0 }
 0x2ab   : > { %p660_p7 = pnand %p658_p6, %p655_p12 }
 0x2ad   : > { %663 = shalt.err (!%p660_p7)
}
 0x2ae   : > { %498 = dma.vmem_to_hbm [thread:$0]  (%p898_p4), %s362_s9, 128, %s945_s3, [#allocation5]  }
 0x2af   : > { %697 = dma.done.wait (%p898_p4), [#allocation5], 128  }
 0x2b0   : > { %699 = vsyncadd (%p898_p4), [#allocation5], 4294967168 }
 0x2b1 PF: > { %s18_s17 = sadd.s32 1, %s722_s17   ;;  %s959_s12 = smov %s706_s13 }
 0x2b2   : > { %p15_p1 = scmp.ge.s32.totalorder %s18_s17, 9   ;;  %s960_s13 = smov %s710_s14 }
 0x2b3   : > { %s961_s14 = smov %s836_s28  ;;  %s962_s15 = smov %s718_s16 }
 0x2b4   : > { %s963_s16 = smov %s965_s25  ;;  %17 = sbr.rel (!%p15_p1) target bundleno = 6 (0x6), region = 83 }
 0x2bb   :  { %374 = vsyncpa [#allocation4], 1 }
 0x2bc   :  { %376 = vsyncpa [#allocation4 + $0x1], 1 }
 0x2bd   :  { %377 = vsyncpa [#allocation7], 1 }
 0x2be   :  { %378 = vsyncpa [#allocation5], 1 }
 0x2bf   :  { %380 = vsyncpa [#allocation5 + $0x1], 1 }

</bundles_post_ra>
